<compile_context>
chip_gen: v7x
topology: tpu7x:2x2x1
jax: 0.10.0
libtpu: 0.0.40
codegen_flags: <defaults>
</compile_context>

<pallas_src>
import functools

import jax
import jax.numpy as jnp
from jax.experimental import pallas as pl
from jax.experimental.pallas import tpu as pltpu

_LANE = 128
_SUB = 8
_UNIT = _LANE * _SUB          # 1024 pixels = one f32 vreg
_GRAIN_ROWS = 32              # row granularity of large blocks (int8-safe)


def _focal_loss_kernel(logits_ref, tgt_ref, out_ref, *, gamma, hw, need_mask):
    # logits_ref: (1, C, R, 128)  input dtype
    # tgt_ref:    (1, R, 128)     int8/int16/int32
    # out_ref:    (1, 8, 128)     f32 partial sums for this (batch, pixel-block)
    C = logits_ref.shape[1]
    R = tgt_ref.shape[1]
    t = tgt_ref[0].astype(jnp.int32)                        # (R, 128)

    # Pass 1: per-pixel running max over the small static class axis.
    # One (R,128) plane at a time -> no (C,R,128) f32 temporaries in VMEM.
    m = logits_ref[0, 0].astype(jnp.float32)
    for c in range(1, C):
        m = jnp.maximum(m, logits_ref[0, c].astype(jnp.float32))

    # Pass 2: accumulate sum(exp(x_c - m)) and select the target class plane
    # (direct scalar-class compare; no iota / one-hot multiply).
    s = jnp.zeros_like(m)
    sel = jnp.zeros_like(m)
    for c in range(C):
        sh = logits_ref[0, c].astype(jnp.float32) - m
        s = s + jnp.exp(sh)
        sel = jnp.where(t == c, sh, sel)

    # NOTE: like torch.gather, targets must lie in [0, C); there is no
    # ignore_index handling (out-of-range targets are caller error).
    log_pt = sel - jnp.log(s)                                # (R, 128)
    pt = jnp.exp(log_pt)
    one_m_pt = 1.0 - pt
    if gamma == 2:
        w = one_m_pt * one_m_pt                              # explicit square
    else:
        w = one_m_pt ** gamma
    loss = -w * log_pt

    if need_mask:
        # Zero pixels past the true H*W extent (128-alignment pad and/or the
        # ragged last pixel-block whose out-of-bounds reads are garbage).
        # The select also kills any NaN/Inf produced by garbage logits.
        j = pl.program_id(1)
        row = jax.lax.broadcasted_iota(jnp.int32, loss.shape, 0) + j * R
        lane = jax.lax.broadcasted_iota(jnp.int32, loss.shape, 1)
        loss = jnp.where(row * _LANE + lane < hw, loss, 0.0)

    # Fold (R,128) rows into the (8,128) partial: whole-vreg adds only,
    # no cross-lane / XLU reduction inside the kernel.
    out_ref[0] = jnp.sum(loss.reshape(R // _SUB, _SUB, _LANE), axis=0)


def _round_up(x, m):
    return (x + m - 1) // m * m


def _round_down(x, m):
    return (x // m) * m


def focal_loss(inputs, targets, *, gamma=2, reduction="mean", tile_rows=None):
    """inputs: (N, C, H, W) float logits, targets: (N, H, W) int class idx."""
    if reduction not in ("mean", "sum"):
        # TODO(synk): reduction='none' (per-pixel (N,1,H,W) loss map) needs a
        # per-pixel-output kernel; only 'mean'/'sum' are implemented here.
        raise NotImplementedError("reduction='none' not implemented")

    N, C, H, W = inputs.shape
    HW = H * W
    itemsize = jnp.dtype(inputs.dtype).itemsize

    # Free reshapes: pixels stay the fast (lane) axis.
    logits3 = inputs.reshape(N, C, HW)
    tgt2 = targets.reshape(N, HW)
    if tgt2.dtype not in (jnp.dtype(jnp.int8), jnp.dtype(jnp.int16),
                          jnp.dtype(jnp.int32)):
        tgt2 = tgt2.astype(jnp.int32)

    # The lane-major reshape needs HW % 128 == 0; only that (rare) case pays a
    # pad pass.  Tiny images (< 4096 px) additionally pad to whole vregs so
    # the single block keeps row-count % 8 == 0 — negligible cost there.
    R_tot = pl.cdiv(HW, _LANE)
    small = R_tot < _GRAIN_ROWS
    HW_pad = _round_up(HW, _UNIT if small else _LANE)
    if HW_pad != HW:
        logits3 = jnp.pad(logits3, ((0, 0), (0, 0), (0, HW_pad - HW)))
        tgt2 = jnp.pad(tgt2, ((0, 0), (0, HW_pad - HW)))
    R_tot = HW_pad // _LANE

    # ---- per-generation block sizing (kernel is HBM-bandwidth bound) -------
    try:
        vmem_cap = int(getattr(pltpu.get_tpu_info(), "vmem_capacity_bytes",
                               64 << 20))
    except Exception:  # pragma: no cover - conservative fallback
        vmem_cap = 64 << 20
    budget = (vmem_cap * 3) // 4                  # leave compiler headroom
    # ~12 MiB logit blocks on 128 MiB parts (v5e/v6e), ~6 MiB on v7x (64 MiB).
    target_blk = (12 << 20) if vmem_cap >= (100 << 20) else (6 << 20)
    tgt_itemsize = jnp.dtype(tgt2.dtype).itemsize

    def _need_bytes(rows):
        p = rows * _LANE
        return (2 * C * p * itemsize          # double-buffered logits block
                + 2 * p * tgt_itemsize        # double-buffered targets block
                + 5 * p * 4                   # f32 temporaries (m, s, sel, ..)
                + (1 << 20))                  # slack

    if small:
        R_blk = R_tot                          # one block per batch
    else:
        if tile_rows is not None:
            R_blk = max(_GRAIN_ROWS, _round_down(tile_rows, _GRAIN_ROWS))
        else:
            R_blk = max(_GRAIN_ROWS,
                        _round_down(target_blk // (C * itemsize * _LANE),
                                    _GRAIN_ROWS))
        R_blk = min(R_blk, _round_down(R_tot, _GRAIN_ROWS))
        while R_blk > _GRAIN_ROWS and _need_bytes(R_blk) > budget:
            R_blk = max(_GRAIN_ROWS, _round_down(R_blk // 2, _GRAIN_ROWS))

    # Keep narrow targets narrow only when the block row-count satisfies their
    # packed sublane tiling ((32,128) int8 / (16,128) int16); otherwise widen.
    min_rows = {1: 32, 2: 16, 4: 8}[tgt_itemsize]
    if R_blk % min_rows != 0:
        tgt2 = tgt2.astype(jnp.int32)
        tgt_itemsize = 4

    grid_j = pl.cdiv(R_tot, R_blk)
    need_mask = (grid_j * R_blk * _LANE) != HW

    logits4 = logits3.reshape(N, C, R_tot, _LANE)
    tgt3 = tgt2.reshape(N, R_tot, _LANE)

    vmem_limit = int(min(max(_need_bytes(R_blk) + (2 << 20), 32 << 20), budget))

    kernel = functools.partial(_focal_loss_kernel, gamma=gamma, hw=HW,
                               need_mask=need_mask)

    partials = pl.pallas_call(
        kernel,
        out_shape=jax.ShapeDtypeStruct((N * grid_j, _SUB, _LANE), jnp.float32),
        grid_spec=pltpu.PrefetchScalarGridSpec(
            num_scalar_prefetch=0,
            grid=(N, grid_j),
            in_specs=[
                pl.BlockSpec((1, C, R_blk, _LANE), lambda n, j: (n, 0, j, 0)),
                pl.BlockSpec((1, R_blk, _LANE), lambda n, j: (n, j, 0)),
            ],
            out_specs=pl.BlockSpec((1, _SUB, _LANE),
                                   lambda n, j: (n * grid_j + j, 0, 0)),
        ),
        compiler_params=pltpu.CompilerParams(
            dimension_semantics=("parallel", "parallel"),
            vmem_limit_bytes=vmem_limit,
        ),
    )(logits4, tgt3)

    total = jnp.sum(partials, dtype=jnp.float32)
    if reduction == "mean":
        return total / jnp.float32(N * HW)
    return total


def _reference_focal_loss(inputs, targets, gamma=2):
    log_probs = jax.nn.log_softmax(inputs, axis=1)            # (N, C, H, W)
    log_pt = jnp.take_along_axis(log_probs, targets[:, None], axis=1)
    pt = jnp.exp(log_pt)
    loss = -((1.0 - pt) ** gamma) * log_pt
    return loss.mean()


if __name__ == "__main__":
    key = jax.random.PRNGKey(0)
    k1, k2, k3, k4 = jax.random.split(key, 4)

    # Test 1: tiny UNet-style shapes (single-block-per-batch path).
    N, C, H, W = 2, 4, 16, 16
    inputs = jax.random.normal(k1, (N, C, H, W), dtype=jnp.float32)
    targets = jax.random.randint(k2, (N, H, W), 0, C, dtype=jnp.int32)
    out = jax.block_until_ready(focal_loss(inputs, targets, gamma=2))
    ref = _reference_focal_loss(inputs, targets, gamma=2)
    assert jnp.allclose(out, ref, rtol=1e-5, atol=1e-6), (out, ref)

    # Test 2: non-128-aligned spatial extent (tiled + ragged-tail mask path).
    N2, C2, H2, W2 = 1, 3, 72, 72
    inputs2 = jax.random.normal(k3, (N2, C2, H2, W2), dtype=jnp.float32)
    targets2 = jax.random.randint(k4, (N2, H2, W2), 0, C2, dtype=jnp.int32)
    out2 = jax.block_until_ready(focal_loss(inputs2, targets2, gamma=2))
    ref2 = _reference_focal_loss(inputs2, targets2, gamma=2)
    assert jnp.allclose(out2, ref2, rtol=1e-5, atol=1e-6), (out2, ref2)

    print("KERNEL_OK")
</pallas_src>

<mosaic_0001>
module attributes {stable_mosaic.version = 11 : i64} {
  func.func @_focal_loss_kernel(%arg0: i32, %arg1: i32, %arg2: memref<1x4x8x128xf32, #tpu.memory_space<vmem>>, %arg3: memref<1x8x128xi32, #tpu.memory_space<vmem>>, %arg4: memref<1x8x128xf32, #tpu.memory_space<vmem>>) attributes {dimension_semantics = [#tpu.dimension_semantics<parallel>, #tpu.dimension_semantics<parallel>], iteration_bounds = array<i64: 2, 1>, scalar_prefetch = 0 : i64, scratch_operands = 0 : i64, tpu.core_type = #tpu.core_type<tc>, window_params = [{transform_indices = @transform_0, window_bounds = array<i64: 1, 4, 8, 128>}, {transform_indices = @transform_1, window_bounds = array<i64: 1, 8, 128>}, {transform_indices = @transform_2, window_bounds = array<i64: 1, 8, 128>}]} {
    %c0 = arith.constant 0 : index
    %c0_0 = arith.constant 0 : index
    %c0_1 = arith.constant 0 : index
    %0 = vector.load %arg3[%c0, %c0_0, %c0_1] : memref<1x8x128xi32, #tpu.memory_space<vmem>>, vector<1x8x128xi32>
    %1 = vector.shape_cast %0 : vector<1x8x128xi32> to vector<8x128xi32>
    %c0_2 = arith.constant 0 : index
    %c0_3 = arith.constant 0 : index
    %c0_4 = arith.constant 0 : index
    %c0_5 = arith.constant 0 : index
    %2 = vector.load %arg2[%c0_2, %c0_3, %c0_4, %c0_5] : memref<1x4x8x128xf32, #tpu.memory_space<vmem>>, vector<1x1x8x128xf32>
    %3 = vector.shape_cast %2 : vector<1x1x8x128xf32> to vector<8x128xf32>
    %c0_6 = arith.constant 0 : index
    %c1 = arith.constant 1 : index
    %c0_7 = arith.constant 0 : index
    %c0_8 = arith.constant 0 : index
    %4 = vector.load %arg2[%c0_6, %c1, %c0_7, %c0_8] : memref<1x4x8x128xf32, #tpu.memory_space<vmem>>, vector<1x1x8x128xf32>
    %5 = vector.shape_cast %4 : vector<1x1x8x128xf32> to vector<8x128xf32>
    %6 = arith.maximumf %3, %5 : vector<8x128xf32>
    %c0_9 = arith.constant 0 : index
    %c2 = arith.constant 2 : index
    %c0_10 = arith.constant 0 : index
    %c0_11 = arith.constant 0 : index
    %7 = vector.load %arg2[%c0_9, %c2, %c0_10, %c0_11] : memref<1x4x8x128xf32, #tpu.memory_space<vmem>>, vector<1x1x8x128xf32>
    %8 = vector.shape_cast %7 : vector<1x1x8x128xf32> to vector<8x128xf32>
    %9 = arith.maximumf %6, %8 : vector<8x128xf32>
    %c0_12 = arith.constant 0 : index
    %c3 = arith.constant 3 : index
    %c0_13 = arith.constant 0 : index
    %c0_14 = arith.constant 0 : index
    %10 = vector.load %arg2[%c0_12, %c3, %c0_13, %c0_14] : memref<1x4x8x128xf32, #tpu.memory_space<vmem>>, vector<1x1x8x128xf32>
    %11 = vector.shape_cast %10 : vector<1x1x8x128xf32> to vector<8x128xf32>
    %12 = arith.maximumf %9, %11 : vector<8x128xf32>
    %cst = arith.constant 0.000000e+00 : f32
    %13 = vector.broadcast %cst : f32 to vector<8x128xf32>
    %cst_15 = arith.constant 0.000000e+00 : f32
    %14 = vector.broadcast %cst_15 : f32 to vector<8x128xf32>
    %c0_16 = arith.constant 0 : index
    %c0_17 = arith.constant 0 : index
    %c0_18 = arith.constant 0 : index
    %c0_19 = arith.constant 0 : index
    %15 = vector.load %arg2[%c0_16, %c0_17, %c0_18, %c0_19] : memref<1x4x8x128xf32, #tpu.memory_space<vmem>>, vector<1x1x8x128xf32>
    %16 = vector.shape_cast %15 : vector<1x1x8x128xf32> to vector<8x128xf32>
    %17 = arith.subf %16, %12 : vector<8x128xf32>
    %18 = math.exp %17 : vector<8x128xf32>
    %19 = arith.addf %13, %18 : vector<8x128xf32>
    %c0_i32 = arith.constant 0 : i32
    %20 = vector.broadcast %c0_i32 : i32 to vector<8x128xi32>
    %21 = arith.cmpi eq, %1, %20 : vector<8x128xi32>
    %22 = arith.select %21, %17, %14 : vector<8x128xi1>, vector<8x128xf32>
    %c0_20 = arith.constant 0 : index
    %c1_21 = arith.constant 1 : index
    %c0_22 = arith.constant 0 : index
    %c0_23 = arith.constant 0 : index
    %23 = vector.load %arg2[%c0_20, %c1_21, %c0_22, %c0_23] : memref<1x4x8x128xf32, #tpu.memory_space<vmem>>, vector<1x1x8x128xf32>
    %24 = vector.shape_cast %23 : vector<1x1x8x128xf32> to vector<8x128xf32>
    %25 = arith.subf %24, %12 : vector<8x128xf32>
    %26 = math.exp %25 : vector<8x128xf32>
    %27 = arith.addf %19, %26 : vector<8x128xf32>
    %c1_i32 = arith.constant 1 : i32
    %28 = vector.broadcast %c1_i32 : i32 to vector<8x128xi32>
    %29 = arith.cmpi eq, %1, %28 : vector<8x128xi32>
    %30 = arith.select %29, %25, %22 : vector<8x128xi1>, vector<8x128xf32>
    %c0_24 = arith.constant 0 : index
    %c2_25 = arith.constant 2 : index
    %c0_26 = arith.constant 0 : index
    %c0_27 = arith.constant 0 : index
    %31 = vector.load %arg2[%c0_24, %c2_25, %c0_26, %c0_27] : memref<1x4x8x128xf32, #tpu.memory_space<vmem>>, vector<1x1x8x128xf32>
    %32 = vector.shape_cast %31 : vector<1x1x8x128xf32> to vector<8x128xf32>
    %33 = arith.subf %32, %12 : vector<8x128xf32>
    %34 = math.exp %33 : vector<8x128xf32>
    %35 = arith.addf %27, %34 : vector<8x128xf32>
    %c2_i32 = arith.constant 2 : i32
    %36 = vector.broadcast %c2_i32 : i32 to vector<8x128xi32>
    %37 = arith.cmpi eq, %1, %36 : vector<8x128xi32>
    %38 = arith.select %37, %33, %30 : vector<8x128xi1>, vector<8x128xf32>
    %c0_28 = arith.constant 0 : index
    %c3_29 = arith.constant 3 : index
    %c0_30 = arith.constant 0 : index
    %c0_31 = arith.constant 0 : index
    %39 = vector.load %arg2[%c0_28, %c3_29, %c0_30, %c0_31] : memref<1x4x8x128xf32, #tpu.memory_space<vmem>>, vector<1x1x8x128xf32>
    %40 = vector.shape_cast %39 : vector<1x1x8x128xf32> to vector<8x128xf32>
    %41 = arith.subf %40, %12 : vector<8x128xf32>
    %42 = math.exp %41 : vector<8x128xf32>
    %43 = arith.addf %35, %42 : vector<8x128xf32>
    %c3_i32 = arith.constant 3 : i32
    %44 = vector.broadcast %c3_i32 : i32 to vector<8x128xi32>
    %45 = arith.cmpi eq, %1, %44 : vector<8x128xi32>
    %46 = arith.select %45, %41, %38 : vector<8x128xi1>, vector<8x128xf32>
    %47 = math.log %43 : vector<8x128xf32>
    %48 = arith.subf %46, %47 : vector<8x128xf32>
    %49 = math.exp %48 : vector<8x128xf32>
    %cst_32 = arith.constant 1.000000e+00 : f32
    %50 = vector.broadcast %cst_32 : f32 to vector<8x128xf32>
    %51 = arith.subf %50, %49 : vector<8x128xf32>
    %52 = arith.mulf %51, %51 : vector<8x128xf32>
    %cst_33 = arith.constant 0.000000e+00 : f32
    %53 = vector.broadcast %cst_33 : f32 to vector<8x128xf32>
    %54 = arith.subf %53, %52 : vector<8x128xf32>
    %55 = arith.mulf %54, %48 : vector<8x128xf32>
    %56 = tpu.iota {dimensions = array<i32: 0>} : vector<8x128xi32>
    %c8_i32 = arith.constant 8 : i32
    %57 = arith.muli %arg1, %c8_i32 : i32
    %58 = vector.broadcast %57 : i32 to vector<8x128xi32>
    %59 = arith.addi %56, %58 : vector<8x128xi32>
    %60 = tpu.iota {dimensions = array<i32: 1>} : vector<8x128xi32>
    %c128_i32 = arith.constant 128 : i32
    %61 = vector.broadcast %c128_i32 : i32 to vector<8x128xi32>
    %62 = arith.muli %59, %61 : vector<8x128xi32>
    %63 = arith.addi %62, %60 : vector<8x128xi32>
    %c256_i32 = arith.constant 256 : i32
    %64 = vector.broadcast %c256_i32 : i32 to vector<8x128xi32>
    %65 = arith.cmpi slt, %63, %64 : vector<8x128xi32>
    %cst_34 = arith.constant 0.000000e+00 : f32
    %66 = vector.broadcast %cst_34 : f32 to vector<8x128xf32>
    %67 = arith.select %65, %55, %66 : vector<8x128xi1>, vector<8x128xf32>
    %68 = vector.shape_cast %67 : vector<8x128xf32> to vector<1x8x128xf32>
    %cst_35 = arith.constant dense<0.000000e+00> : vector<8x128xf32>
    %69 = vector.multi_reduction <add>, %68, %cst_35 [0] : vector<1x8x128xf32> to vector<8x128xf32>
    %c0_36 = arith.constant 0 : index
    %c0_37 = arith.constant 0 : index
    %c0_38 = arith.constant 0 : index
    %70 = vector.load %arg4[%c0_36, %c0_37, %c0_38] : memref<1x8x128xf32, #tpu.memory_space<vmem>>, vector<1x8x128xf32>
    %71 = vector.shape_cast %70 : vector<1x8x128xf32> to vector<8x128xf32>
    %72 = vector.shape_cast %69 : vector<8x128xf32> to vector<1x8x128xf32>
    tpu.vector_store %arg4[%c0_36, %c0_37, %c0_38], %72 {strides = array<i32>} : memref<1x8x128xf32, #tpu.memory_space<vmem>>, vector<1x8x128xf32>,
    return
  }
  func.func @transform_0(%arg0: i32, %arg1: i32) -> (i32, i32, i32, i32) {
    %c0_i32 = arith.constant 0 : i32
    %c0_i32_0 = arith.constant 0 : i32
    %c0_i32_1 = arith.constant 0 : i32
    return %arg0, %c0_i32, %arg1, %c0_i32_0 : i32, i32, i32, i32
  }
  func.func @transform_1(%arg0: i32, %arg1: i32) -> (i32, i32, i32) {
    %c0_i32 = arith.constant 0 : i32
    %c0_i32_0 = arith.constant 0 : i32
    return %arg0, %arg1, %c0_i32 : i32, i32, i32
  }
  func.func @transform_2(%arg0: i32, %arg1: i32) -> (i32, i32, i32) {
    %c1_i32 = arith.constant 1 : i32
    %0 = arith.muli %arg0, %c1_i32 : i32
    %1 = arith.addi %0, %arg1 : i32
    %c0_i32 = arith.constant 0 : i32
    %c0_i32_0 = arith.constant 0 : i32
    %c0_i32_1 = arith.constant 0 : i32
    return %1, %c0_i32, %c0_i32_0 : i32, i32, i32
  }
}

</mosaic_0001>

<bundles_post_ra>
// kernel: tpu_custom_call.1
= control target key start
LH: loop header
LB: loop body
LE: loop exit
PB: predicated region body
PF: predicated region fallthrough
CT: control target
= control target key end

     0   :  { %7 = vsyncpa [#allocation3], 0  ;;  %s886_s0 = inlined_call_operand.hbm [shape: f32[2,4,8,128], index: 0, kind: input, shape index: {}]   ;;  %s887_s1 = inlined_call_operand.hbm [shape: s32[2,8,128], index: 1, kind: input, shape index: {}]   ;;  %s888_s2 = inlined_call_operand.hbm [shape: f32[2,8,128], index: 2, kind: output, shape index: {}]  }
   0x1   :  { %9 = vsyncpa [#allocation3 + $0x1], 0 }
   0x2   :  { %10 = vsyncpa [#allocation6], 0 }
   0x3   :  { %12 = vsyncpa [#allocation6 + $0x1], 0 }
   0x4   :  { %13 = vsyncpa [#allocation4], 0 }
   0x5   :  { %15 = vsyncpa [#allocation4 + $0x1], 0  ;;  %s667_s9 = smov 0   ;;  %s669_s10 = smov 0  }
   0x6   :  { %s671_s11 = smov 0   ;;  %s673_s12 = smov 0  }
   0x7   :  { %s675_s13 = smov 0   ;;  %s677_s14 = smov 0  }
   0x8 LB: > { %s397_s15 = sadd.s32 4294967295, %s645_s14   ;;  %s398_s16 = sadd.s32 4294967294, %s645_s14   ;;  %s645_s14 = sphi %s677_s14, %s21_s14   ;;  %s641_s13 = sphi %s675_s13, %s907_s13   ;;  %s637_s12 = sphi %s673_s12, %s906_s12   ;;  %s633_s11 = sphi %s671_s11, %s905_s11   ;;  %s629_s10 = sphi %s669_s10, %s904_s10   ;;  %s625_s9 = sphi %s667_s9, %s903_s9  }
   0x9   : > { %s33_s17 = sadd.s32 1, %s641_s13  ;;  %s42_s18 = sadd.s32 1, %s633_s11 }
   0xa   : > { %p35_p0 = scmp.ge.s32.totalorder %s33_s17, 2  ;;  %p49_p1 = scmp.ne.s32.totalorder %s633_s11, %s629_s10 }
   0xb   : > { %p50_p2 = scmp.eq.s32.totalorder %s645_s14, 0  ;;  %p55_p3 = scmp.ne.s32.totalorder %s629_s10, %s625_s9 }
   0xc   : > { %s909_s17 = smov (%p35_p0, %s33_s17), 0  ;;  %p56_p5 = scmp.eq.s32.totalorder %s397_s15, 0 }
   0xd   : > { %p708_p4 = por %p50_p2, %p49_p1  ;;  %s37_s20 = ssub.s32 %s641_s13, %s909_s17 }
   0xe   : > { %p109_p6 = scmp.eq.s32.totalorder %s397_s15, 1  ;;  %p40_p7 = scmp.eq.s32.totalorder %s37_s20, 0 }
   0xf   : > { %p714_p8 = por %p56_p5, %p55_p3  ;;  %p115_p10 = scmp.eq.s32.totalorder %s398_s16, 1 }
  0x10   : > { %p718_p9 = por %p109_p6, %p49_p1  ;;  %p435_p13 = scmp.lt.s32.totalorder %s645_s14, 2 }
  0x11   : > { %s892_s21 = scalar_select %p714_p8, 1, 0 }
  0x12   : > { %s893_s22 = scalar_select %p718_p9, 1, 0 }
  0x13   : > { %s723_s23 = scalar_select %p40_p7, %s633_s11, %s42_s18  }
  0x14   : > { %p725_p11 = por %p115_p10, %p55_p3  ;;  %s732_s25 = sand.u32 1, %s633_s11  }
  0x15   : > { %s401_s26 = sshll.u32 %s732_s25, 5  ;;  %s417_s27 = sshll.u32 %s641_s13, 9 }
  0x16   : > { %s894_s24 = scalar_select %p725_p11, 1, 0 }
  0x17   : > { %s739_s30 = scalar_lea.hbm %s886_s0, %s417_s27  ;;  %s139_s3 = scalar_lea.vmem [#allocation2], %s401_s26 }
  0x18   : > { %s147_s4 = sshll.u32 %s139_s3, 4  ;;  %p745_p0 = pnand %p435_p13, %p708_p4  ;;  %s741_s4 = int_to_ptr.vmem [resolvable:$true] %s147_s4 }
  0x19   : > { %s136_s6 = scalar_lea.sflag [#allocation3], %s732_s25  ;;  %s499_s7 = scalar_lea.hbm %s739_s30, 512 }
  0x1a   : > { %p500_p2 = scmp.ne.s32.totalorder %s739_s30, %s499_s7  ;;  %p501_p3 = pneg %p745_p0 }
  0x1b   : > { %s504_s16 = scalar_lea.hbm %s886_s0, 1024  ;;  %p505_p4 = scmp.lt.u32.totalorder %s739_s30, %s886_s0 }
  0x1c   : > { %p502_p5 = pnand %p501_p3, %p500_p2  ;;  %p506_p7 = scmp.lt.u32.totalorder %s504_s16, %s499_s7 }
  0x1d   : > { %p508_p13 = scmp.lt.u32.totalorder %s499_s7, %s739_s30 }
  0x1e   : > { %p503_p6 = pneg %p502_p5  ;;  %p507_p10 = por %p506_p7, %p505_p4 }
  0x20   : > { %p509_p12 = por %p508_p13, %p507_p10 }
  0x22   : > { %p510_p1 = pnand %p509_p12, %p503_p6 }
  0x24   : > { %513 = shalt.err (!%p510_p1)
}
  0x25   : > { %s514_s20 = scalar_lea.vmem %s741_s4, 512  ;;  %s647_s26 = smov [#allocation2]  }
  0x26   : > { %p515_p2 = scmp.ne.s32.totalorder %s741_s4, %s514_s20  ;;  %s519_s27 = sshll.u32 %s647_s26, 4  ;;  %s520_s27 = int_to_ptr.vmem [resolvable:$false] %s519_s27 }
  0x27   : > { %s521_s28 = scalar_lea.vmem %s520_s27, 1024  ;;  %p522_p9 = scmp.lt.s32.totalorder %s741_s4, %s520_s27 }
  0x28   : > { %p517_p5 = pnand %p515_p2, %p501_p3  ;;  %p523_p4 = scmp.lt.s32.totalorder %s521_s28, %s514_s20 }
  0x2a   : > { %p518_p11 = pneg %p517_p5  ;;  %p524_p7 = por %p523_p4, %p522_p9 }
  0x2c   : > { %p525_p10 = pnand %p524_p7, %p518_p11 }
  0x2e   : > { %528 = shalt.err (!%p525_p10)
}
  0x2f   : > { %s648_s29 = smov 128   ;;  %s649_s3 = smov 8  }
  0x30   : > { %427 = dma.hbm_to_vmem [thread:$0]  (!%p745_p0), %s739_s30, 512, %s741_s4, %s136_s6, %s648_s29, %s648_s29, %s649_s3  }
  0x31   : > { %p174_p12 = scmp.lt.s32.totalorder %s645_s14, 3  ;;  %s404_s7 = sshll.u32 %s732_s25, 3 }
  0x32   : > { %s405_s8 = sshll.u32 %s641_s13, 7  ;;  %p896_p9 = scmp.ge.s32.totalorder %s645_s14, 1 }
  0x33   : > { %s790_s19 = scalar_lea.hbm %s887_s1, %s405_s8  ;;  %s161_s20 = scalar_lea.vmem [#allocation5], %s404_s7 }
  0x34   : > { %p783_p11 = pnand %p896_p9, %p174_p12  ;;  %s169_s26 = sshll.u32 %s161_s20, 4  ;;  %s170_s26 = int_to_ptr.vmem [resolvable:$true] %s169_s26 }
  0x35   : > { %s158_s30 = scalar_lea.sflag [#allocation6], %s732_s25  ;;  %s529_s4 = scalar_lea.hbm %s790_s19, 128 }
  0x36   : > { %s897_s15 = scalar_select %p783_p11, 1, 0 }
  0x37   : > { %p530_p1 = scmp.ne.s32.totalorder %s790_s19, %s529_s4  ;;  %s534_s28 = scalar_lea.hbm %s887_s1, 256 }
  0x38   : > { %p535_p2 = scmp.lt.u32.totalorder %s790_s19, %s887_s1  ;;  %p536_p5 = scmp.lt.u32.totalorder %s534_s28, %s529_s4 }
  0x39   : > { %p532_p6 = pnand %p530_p1, %p501_p3  ;;  %p538_p7 = scmp.lt.u32.totalorder %s529_s4, %s790_s19 }
  0x3a   : > { %p537_p4 = por %p536_p5, %p535_p2 }
  0x3b   : > { %p533_p13 = pneg %p532_p6 }
  0x3c   : > { %p539_p10 = por %p538_p7, %p537_p4 }
  0x3e   : > { %p540_p12 = pnand %p539_p10, %p533_p13 }
  0x40   : > { %543 = shalt.err (!%p540_p12)
}
  0x41   : > { %s544_s25 = scalar_lea.vmem %s170_s26, 128  ;;  %s650_s7 = smov [#allocation5]  }
  0x42   : > { %p545_p9 = scmp.ne.s32.totalorder %s170_s26, %s544_s25  ;;  %s549_s8 = sshll.u32 %s650_s7, 4  ;;  %s550_s8 = int_to_ptr.vmem [resolvable:$false] %s549_s8 }
  0x43   : > { %s551_s16 = scalar_lea.vmem %s550_s8, 256  ;;  %p552_p8 = scmp.lt.s32.totalorder %s170_s26, %s550_s8 }
  0x44   : > { %p547_p1 = pnand %p545_p9, %p501_p3  ;;  %p553_p11 = scmp.lt.s32.totalorder %s551_s16, %s544_s25 }
  0x46   : > { %p548_p6 = pneg %p547_p1  ;;  %p554_p2 = por %p553_p11, %p552_p8 }
  0x48   : > { %p555_p5 = pnand %p554_p2, %p548_p6 }
  0x4a   : > { %558 = shalt.err (!%p555_p5)
}
  0x4b   : > { %430 = dma.hbm_to_vmem [thread:$0]  (!%p745_p0), %s790_s19, 128, %s170_s26, %s158_s30  }
  0x4c   : > { %p898_p13 = scmp.ne.s32.totalorder %s897_s15, 0 }
  0x4d   : > { %s815_s18 = sand.u32 (!%p898_p13), 1, %s629_s10   ;;  %p899_p3 = scmp.ne.s32.totalorder (!%p898_p13), %s892_s21, 0 }
  0x4e   : > { %178 = sbr.rel (%p898_p13) target bundleno = 169 (0xa9), region = 28  ;;  %s407_s20 = sshll.u32 (!%p898_p13), %s815_s18, 5 }
  0x4f   : > { %s181_s4 = scalar_lea.sflag (!%p898_p13), [#allocation3], %s815_s18  ;;  %s184_s6 = scalar_lea.vmem (!%p898_p13), [#allocation2], %s407_s20 }
  0x55   : > { %612 = dma.done.wait (%p899_p3), %s181_s4, 512  }
  0x56   : > { %614 = vsyncadd (%p899_p3), %s181_s4, 4294966784  ;;  %s408_s5 = sshll.u32 %s815_s18, 3  ;;  %s190_s15 = scalar_lea.sflag [#allocation6], %s815_s18 }
  0x57   : > { %s193_s19 = scalar_lea.vmem [#allocation5], %s408_s5 }
  0x58   : > { %616 = dma.done.wait (%p899_p3), %s190_s15, 128  }
  0x59   : > { %618 = vsyncadd (%p899_p3), %s190_s15, 4294967168  ;;  %v221_v0 = vld [vmem:[%s184_s6] sm:$0xff]  ;;  %v410_v1 = vld [vmem:[%s184_s6 + $0x8] sm:$0xff]  ;;  %v264_v31 = vlaneseq  ;;  %s218_s21 = scalar_lea.vmem [#allocation7], %s408_s5  ;;  %s414_s30 = sshll.u32 %s637_s12, 7 }
  0x5a   : > { %v224_v2 = vmax.f32 %v221_v0, %v410_v1  ;;  %v411_v3 = vld [vmem:[%s184_s6 + $0x10] sm:$0xff]  ;;  %v412_v4 = vld [vmem:[%s184_s6 + $0x18] sm:$0xff]  ;;  %v220_v20 = vld [vmem:[%s193_s19] sm:$0xff]  ;;  %s292_s26 = sshll.u32 %s218_s21, 4  ;;  %s839_s29 = scalar_lea.hbm %s888_s2, %s414_s30  ;;  %s834_s26 = int_to_ptr.vmem [resolvable:$true] %s292_s26 }
  0x5b   : > { %vm235_vm0 = vcmp.eq.s32.totalorder %v220_v20, 0  ;;  %vm241_vm1 = vcmp.eq.s32.totalorder %v220_v20, 1  ;;  %vm247_vm2 = vcmp.eq.s32.totalorder %v220_v20, 2  ;;  %vm253_vm3 = vcmp.eq.s32.totalorder %v220_v20, 3  ;;  %s278_s3 = scalar_lea.sflag [#allocation4], %s815_s18  ;;  %s559_s25 = scalar_lea.vmem %s834_s26, 128 }
  0x5c   : > { %v227_v5 = vmax.f32 %v224_v2, %v411_v3  ;;  %v265_v32 = vshrl.u32 %v264_v31, 7  ;;  %v270_v33 = vand.u32 127, %v264_v31  ;;  %p560_p8 = scmp.ne.s32.totalorder %s834_s26, %s559_s25  ;;  %p900_p0 = scmp.ne.s32.totalorder %s893_s22, 0 }
  0x5d   : > { %s651_s12 = smov [#allocation7]  }
  0x5e   : > { %v230_v6 = vmax.f32 %v227_v5, %v412_v4  ;;  %v271_v34 = vmul.u32 128, %v265_v32  ;;  %p561_p11 = pnand %p560_p8, %p900_p0  ;;  %s563_s7 = sshll.u32 %s651_s12, 4  ;;  %s564_s7 = int_to_ptr.vmem [resolvable:$false] %s563_s7 }
  0x5f   : > { %s565_s8 = scalar_lea.vmem %s564_s7, 256  ;;  %p566_p7 = scmp.lt.s32.totalorder %s834_s26, %s564_s7 }
  0x60   : > { %v231_v7 = vsub.f32 %v221_v0, %v230_v6  ;;  %v237_v8 = vsub.f32 %v410_v1, %v230_v6  ;;  %v243_v9 = vsub.f32 %v411_v3, %v230_v6  ;;  %v249_v10 = vsub.f32 %v412_v4, %v230_v6  ;;  %p562_p4 = pneg %p561_p11  ;;  %p567_p10 = scmp.lt.s32.totalorder %s565_s8, %s559_s25 }
  0x61   : > { %v272_v37 = vadd.s32 %v271_v34, %v270_v33 }
  0x62   : > { %v232_v11 = vmul.f32 1.442695, %v231_v7  ;;  %v238_v12 = vmul.f32 1.442695, %v237_v8  ;;  %v244_v13 = vmul.f32 1.442695, %v243_v9  ;;  %p568_p12 = por %p567_p10, %p566_p7 }
  0x63   : > { %v250_v14 = vmul.f32 1.442695, %v249_v10  ;;  %v236_v23 = vsel %vm235_vm0, %v231_v7, 0.0  ;;  %vm273_vm4 = vcmp.lt.s32.totalorder %v272_v37, 256 }
  0x64   : > { %487 = vpow2.f32 %v232_v11  ;;  %v242_v24 = vsel %vm241_vm1, %v237_v8, %v236_v23  ;;  %p569_p9 = pnand %p568_p12, %p562_p4 }
  0x65   : > { %489 = vpow2.f32 %v238_v12  ;;  %v248_v25 = vsel %vm247_vm2, %v243_v9, %v242_v24 }
  0x66   : > { %491 = vpow2.f32 %v244_v13  ;;  %v254_v27 = vsel %vm253_vm3, %v249_v10, %v248_v25 }
  0x67   : > { %493 = vpow2.f32 %v250_v14 }
  0x6e   : > { %v488_v15 = vpop.eup %487 }
  0x6f   : > { %v490_v16 = vpop.eup %489 }
  0x70   : > { %v492_v17 = vpop.eup %491  ;;  %v240_v18 = vadd.f32 %v490_v16, %v488_v15 }
  0x71   : > { %v494_v19 = vpop.eup %493 }
  0x72   : > { %v246_v21 = vadd.f32 %v492_v17, %v240_v18 }
  0x74   : > { %v252_v22 = vadd.f32 %v494_v19, %v246_v21 }
  0x76   : > { %495 = vlog2.f32 %v252_v22 }
  0x80   : > { %v496_v26 = vpop.eup %495 }
  0x81   : > { %v256_v28 = vmul.f32 0.6931472, %v496_v26 }
  0x83   : > { %v257_v29 = vsub.f32 %v254_v27, %v256_v28 }
  0x85   : > { %v258_v30 = vmul.f32 1.442695, %v257_v29 }
  0x87   : > { %497 = vpow2.f32 %v258_v30 }
  0x91   : > { %v498_v35 = vpop.eup %497 }
  0x92   : > { %v260_v36 = vsub.f32 1.0, %v498_v35 }
  0x94   : > { %v261_v38 = vmul.f32 %v260_v36, %v260_v36 }
  0x96   : > { %v262_v39 = vsub.f32 0.0, %v261_v38 }
  0x98   : > { %v263_v40 = vmul.f32 %v262_v39, %v257_v29 }
  0x9a   : > { %v274_v41 = vsel %vm273_vm4, %v263_v40, 0.0 }
  0x9b   : > { %276 = vst [vmem:[%s218_s21] sm:$0xff] %v274_v41 }
  0x9c   : > { %572 = shalt.err (!%p569_p9)
}
  0x9d   : > { %s573_s16 = scalar_lea.hbm %s839_s29, 128  ;;  %s577_s4 = scalar_lea.hbm %s888_s2, 256 }
  0x9e   : > { %p574_p1 = scmp.ne.s32.totalorder %s839_s29, %s573_s16  ;;  %p578_p5 = scmp.lt.u32.totalorder %s839_s29, %s888_s2 }
  0x9f   : > { %p579_p13 = scmp.lt.u32.totalorder %s577_s4, %s573_s16  ;;  %p581_p8 = scmp.lt.u32.totalorder %s573_s16, %s839_s29 }
  0xa0   : > { %p575_p6 = pnand %p574_p1, %p900_p0 }
  0xa1   : > { %p580_p3 = por %p579_p13, %p578_p5 }
  0xa2   : > { %p576_p2 = pneg %p575_p6 }
  0xa3   : > { %p582_p11 = por %p581_p8, %p580_p3 }
  0xa5   : > { %p583_p4 = pnand %p582_p11, %p576_p2 }
  0xa7   : > { %586 = shalt.err (!%p583_p4)
}
  0xa8   : > { %422 = dma.vmem_to_hbm [thread:$0]  (%p900_p0), %s834_s26, 128, %s839_s29, %s278_s3  }
  0xa9 PF: > { %s304_s15 = sand.u32 1, %s625_s9   ;;  %p901_p7 = scmp.ne.s32.totalorder %s894_s24, 0 }
  0xaa   : > { %p902_p10 = scmp.ge.s32.totalorder %s645_s14, 2  ;;  %s305_s19 = scalar_lea.sflag [#allocation4], %s304_s15 }
  0xac   : > { %p432_p12 = pnand %p902_p10, %p901_p7 }
  0xae   : > { %620 = dma.done.wait (!%p432_p12), %s305_s19, 128  }
  0xaf   : > { %622 = vsyncadd (!%p432_p12), %s305_s19, 4294967168  ;;  %s21_s14 = sadd.s32 1, %s645_s14   ;;  %s903_s9 = smov %s629_s10 }
  0xb0   : > { %p18_p9 = scmp.ge.s32.totalorder %s21_s14, 4   ;;  %s904_s10 = smov %s633_s11 }
  0xb1   : > { %s905_s11 = smov %s723_s23  ;;  %s906_s12 = smov %s641_s13 }
  0xb2   : > { %s907_s13 = smov %s909_s17  ;;  %20 = sbr.rel (!%p18_p9) target bundleno = 8 (0x8), region = 89 }
  0xb9   :  { %310 = vsyncpa [#allocation3], 1 }
  0xba   :  { %312 = vsyncpa [#allocation3 + $0x1], 1 }
  0xbb   :  { %313 = vsyncpa [#allocation6], 1 }
  0xbc   :  { %315 = vsyncpa [#allocation6 + $0x1], 1 }
  0xbd   :  { %316 = vsyncpa [#allocation4], 1 }
  0xbe   :  { %318 = vsyncpa [#allocation4 + $0x1], 1 }

</bundles_post_ra>
